<compile_context>
chip_gen: v7x
topology: tpu7x:2x2x1
jax: 0.10.0
libtpu: 0.0.40
codegen_flags: <defaults>
</compile_context>

<pallas_src>
import functools

import jax
import jax.numpy as jnp
from jax.experimental import pallas as pl
from jax.experimental.pallas import tpu as pltpu


# --------------------------------------------------------------------------
# Kernel 1: tiled conv-as-matmul (patches @ weight + bias) + partial BN stats
# --------------------------------------------------------------------------
def conv_matmul_kernel(p_ref, w_ref, b_ref, out_ref, stat_ref):
    # p_ref: (tm, Kp) bf16, w_ref: (Kp, Cp) bf16, b_ref: (1, Cp) f32
    acc = jnp.dot(p_ref[...], w_ref[...], preferred_element_type=jnp.float32)
    acc = acc + b_ref[...]                                   # (tm, Cp) f32
    cout = out_ref.shape[-1]
    out_ref[...] = acc[:, :cout].astype(out_ref.dtype)       # HBM stays Cout wide
    # per-block partial stats: row 0 = sum, row 1 = sum of squares (f32)
    stat_ref[...] = jnp.zeros_like(stat_ref)
    stat_ref[0:1, :] = jnp.sum(acc, axis=0, keepdims=True)
    stat_ref[1:2, :] = jnp.sum(acc * acc, axis=0, keepdims=True)


# --------------------------------------------------------------------------
# Kernel 2: BN affine + ReLU + MaxPool2d(kernel=3, stride=2, padding=1)
# Zero padding is equivalent to PyTorch's -inf padding because ReLU output >= 0.
# --------------------------------------------------------------------------
def bn_relu_pool_kernel(x_ref, scale_ref, shift_ref, o_ref, ypad_ref, rmax_ref,
                        *, Ho, Wo, Hp, Wp):
    x = x_ref[0].astype(jnp.float32)                         # (Ho, Wo, C)
    y = jnp.maximum(x * scale_ref[0] + shift_ref[0], 0.0)    # BN affine + ReLU
    # build zero-padded copy in VMEM scratch (pad=1 top/left, >=0 bottom/right)
    ypad_ref[...] = jnp.zeros_like(ypad_ref)
    ypad_ref[1:Ho + 1, 1:Wo + 1, :] = y
    # 3x1 max over rows with stride-2 windows along H (strided reads, major dim)
    rmax_ref[...] = jnp.maximum(
        jnp.maximum(ypad_ref[pl.ds(0, Hp, stride=2), :, :],
                    ypad_ref[pl.ds(1, Hp, stride=2), :, :]),
        ypad_ref[pl.ds(2, Hp, stride=2), :, :])               # (Hp, 2*Wp+1, C)
    # 1x3 max over cols with stride-2 windows along W (strided reads, sublane dim)
    o_ref[0] = jnp.maximum(
        jnp.maximum(rmax_ref[:, pl.ds(0, Wp, stride=2), :],
                    rmax_ref[:, pl.ds(1, Wp, stride=2), :]),
        rmax_ref[:, pl.ds(2, Wp, stride=2), :])               # (Hp, Wp, C)


# --------------------------------------------------------------------------
# Glue: im2col (trace-time slice/stack plumbing, runs as XLA ops)
# --------------------------------------------------------------------------
def im2col_nhwc(x_nhwc, ksize, stride, pad):
    N, H, W, C = x_nhwc.shape
    Ho = (H + 2 * pad - ksize) // stride + 1
    Wo = (W + 2 * pad - ksize) // stride + 1
    xp = jnp.pad(x_nhwc, ((0, 0), (pad, pad), (pad, pad), (0, 0)))
    cols = []
    for kh in range(ksize):
        for kw in range(ksize):
            cols.append(xp[:, kh:kh + stride * Ho:stride,
                           kw:kw + stride * Wo:stride, :])    # (N, Ho, Wo, C)
    patches = jnp.stack(cols, axis=3)                         # (N,Ho,Wo,K*K,C)
    return patches.reshape(N * Ho * Wo, ksize * ksize * C), Ho, Wo


# --------------------------------------------------------------------------
# Forward pass wrapper
# --------------------------------------------------------------------------
def conv1_forward(x_nchw, w, b, gamma, beta, eps=1e-5):
    N, Cin, H, W = x_nchw.shape
    Cout, _, KH, KW = w.shape
    x_nhwc = jnp.transpose(x_nchw, (0, 2, 3, 1)).astype(jnp.float32)

    # TODO(synk): im2col is materialized in HBM by XLA (~KH*KW/stride^2 x input
    # bytes); fusing patch construction into kernel 1 would cut that traffic.
    patches, Ho, Wo = im2col_nhwc(x_nhwc, ksize=KH, stride=2, pad=3)
    M, K = patches.shape

    # lane-align contraction dim (147 -> 256) and MXU N dim (64 -> 128 in-VMEM)
    Kp = ((K + 127) // 128) * 128
    Cp = ((Cout + 127) // 128) * 128

    # M tiling: tm rows per grid step, M padded up to a multiple of tm
    tm = 512 if M >= 512 else ((M + 7) // 8) * 8
    nb = -(-M // tm)
    M_pad = nb * tm

    patches_p = jnp.pad(patches.astype(jnp.bfloat16),
                        ((0, M_pad - M), (0, Kp - K)))
    # weight flattened in (kh, kw, cin) order to match patch feature order
    w2d = jnp.transpose(w, (2, 3, 1, 0)).reshape(KH * KW * Cin, Cout)
    w2d_p = jnp.pad(w2d, ((0, Kp - K), (0, Cp - Cout))).astype(jnp.bfloat16)
    b_p = jnp.pad(b.astype(jnp.float32), (0, Cp - Cout)).reshape(1, Cp)

    conv_flat, stats = pl.pallas_call(
        conv_matmul_kernel,
        out_shape=(jax.ShapeDtypeStruct((M_pad, Cout), jnp.bfloat16),
                   jax.ShapeDtypeStruct((nb * 8, Cp), jnp.float32)),
        grid=(nb,),
        in_specs=[pl.BlockSpec((tm, Kp), lambda i: (i, 0)),
                  pl.BlockSpec((Kp, Cp), lambda i: (0, 0)),
                  pl.BlockSpec((1, Cp), lambda i: (0, 0))],
        out_specs=(pl.BlockSpec((tm, Cout), lambda i: (i, 0)),
                   pl.BlockSpec((8, Cp), lambda i: (i, 0))),
        compiler_params=pltpu.CompilerParams(
            dimension_semantics=("parallel",)),
    )(patches_p, w2d_p, b_p)

    # Training-mode BatchNorm batch statistics (biased variance over N*Ho*Wo).
    # Zero-padded patch rows contribute exactly `bias` per channel -> subtract.
    # TODO(synk): running_mean/running_var buffer updates (stateful) not modeled.
    stats = stats.reshape(nb, 8, Cp)
    bf = b.astype(jnp.float32)
    n_pad_rows = jnp.float32(M_pad - M)
    ch_sum = jnp.sum(stats[:, 0, :Cout], axis=0) - n_pad_rows * bf
    ch_sq = jnp.sum(stats[:, 1, :Cout], axis=0) - n_pad_rows * bf * bf
    count = jnp.float32(M)
    mean = ch_sum / count
    var = ch_sq / count - mean * mean            # biased variance
    invstd = jax.lax.rsqrt(var + eps)
    g = gamma.astype(jnp.float32)
    scale = (g * invstd).reshape(1, 1, 1, Cout)
    shift = (beta.astype(jnp.float32) - mean * g * invstd).reshape(1, 1, 1, Cout)

    conv_nhwc = conv_flat[:M].reshape(N, Ho, Wo, Cout)
    Hp = (Ho + 2 * 1 - 3) // 2 + 1
    Wp = (Wo + 2 * 1 - 3) // 2 + 1

    # TODO(synk): at large resolutions add an H-tiled second ("parallel") grid
    # axis with a 1-row halo so both v7x TensorCores stay busy at small batch.
    pooled_nhwc = pl.pallas_call(
        functools.partial(bn_relu_pool_kernel, Ho=Ho, Wo=Wo, Hp=Hp, Wp=Wp),
        out_shape=jax.ShapeDtypeStruct((N, Hp, Wp, Cout), jnp.float32),
        grid=(N,),
        in_specs=[pl.BlockSpec((1, Ho, Wo, Cout), lambda bi: (bi, 0, 0, 0)),
                  pl.BlockSpec((1, 1, 1, Cout), lambda bi: (0, 0, 0, 0)),
                  pl.BlockSpec((1, 1, 1, Cout), lambda bi: (0, 0, 0, 0))],
        out_specs=pl.BlockSpec((1, Hp, Wp, Cout), lambda bi: (bi, 0, 0, 0)),
        scratch_shapes=[pltpu.VMEM((2 * Hp + 1, 2 * Wp + 1, Cout), jnp.float32),
                        pltpu.VMEM((Hp, 2 * Wp + 1, Cout), jnp.float32)],
        compiler_params=pltpu.CompilerParams(
            dimension_semantics=("parallel",)),
    )(conv_nhwc, scale, shift)

    return jnp.transpose(pooled_nhwc, (0, 3, 1, 2))          # NHWC -> NCHW


if __name__ == "__main__":
    key = jax.random.PRNGKey(0)
    kx, kw, kb = jax.random.split(key, 3)

    # small shapes consistent with the module: NCHW input (2, 3, 16, 16)
    x = jax.random.normal(kx, (2, 3, 16, 16), dtype=jnp.float32)
    w = 0.05 * jax.random.normal(kw, (64, 3, 7, 7), dtype=jnp.float32)
    b = 0.05 * jax.random.normal(kb, (64,), dtype=jnp.float32)
    gamma = jnp.ones((64,), dtype=jnp.float32)
    beta = jnp.zeros((64,), dtype=jnp.float32)

    out = jax.jit(conv1_forward)(x, w, b, gamma, beta)
    out = jax.block_until_ready(out)
    assert out.shape == (2, 64, 4, 4), out.shape
    assert out.dtype == jnp.float32
    print("KERNEL_OK")
</pallas_src>

<mosaic_0001>
module attributes {stable_mosaic.version = 11 : i64} {
  func.func @conv_matmul_kernel(%arg0: i32, %arg1: memref<128x256xbf16, #tpu.memory_space<vmem>>, %arg2: memref<256x128xbf16, #tpu.memory_space<vmem>>, %arg3: memref<1x128xf32, #tpu.memory_space<vmem>>, %arg4: memref<128x64xbf16, #tpu.memory_space<vmem>>, %arg5: memref<8x128xf32, #tpu.memory_space<vmem>>) attributes {dimension_semantics = [#tpu.dimension_semantics<parallel>], iteration_bounds = array<i64: 1>, scalar_prefetch = 0 : i64, scratch_operands = 0 : i64, tpu.core_type = #tpu.core_type<tc>, window_params = [{transform_indices = @transform_0, window_bounds = array<i64: 128, 256>}, {pipeline_mode = #tpu.pipeline_mode<synchronous>, transform_indices = @transform_1, window_bounds = array<i64: 256, 128>}, {pipeline_mode = #tpu.pipeline_mode<synchronous>, transform_indices = @transform_2, window_bounds = array<i64: 1, 128>}, {transform_indices = @transform_3, window_bounds = array<i64: 128, 64>}, {transform_indices = @transform_4, window_bounds = array<i64: 8, 128>}]} {
    %c0 = arith.constant 0 : index
    %c0_0 = arith.constant 0 : index
    %0 = vector.load %arg1[%c0, %c0_0] : memref<128x256xbf16, #tpu.memory_space<vmem>>, vector<128x256xbf16>
    %c0_1 = arith.constant 0 : index
    %c0_2 = arith.constant 0 : index
    %1 = vector.load %arg2[%c0_1, %c0_2] : memref<256x128xbf16, #tpu.memory_space<vmem>>, vector<256x128xbf16>
    %cst = arith.constant dense<0.000000e+00> : vector<128x128xf32>
    %2 = tpu.matmul %0, %1, %cst {dimension_numbers = #tpu.dot_dimension_numbers<[1], [0], [0], [1], [0, 0, 1, 1], [], []>} : vector<128x256xbf16>, vector<256x128xbf16>, vector<128x128xf32> -> vector<128x128xf32>
    %c0_3 = arith.constant 0 : index
    %c0_4 = arith.constant 0 : index
    %3 = vector.load %arg3[%c0_3, %c0_4] : memref<1x128xf32, #tpu.memory_space<vmem>>, vector<1x128xf32>
    %4 = vector.broadcast %3 : vector<1x128xf32> to vector<128x128xf32>
    %5 = arith.addf %2, %4 : vector<128x128xf32>
    %6 = vector.extract_strided_slice %5 {offsets = [0, 0], sizes = [128, 64], strides = [1, 1]} : vector<128x128xf32> to vector<128x64xf32>
    %7 = arith.truncf %6 : vector<128x64xf32> to vector<128x64xbf16>
    %c0_5 = arith.constant 0 : index
    %c0_6 = arith.constant 0 : index
    %8 = vector.load %arg4[%c0_5, %c0_6] : memref<128x64xbf16, #tpu.memory_space<vmem>>, vector<128x64xbf16>
    tpu.vector_store %arg4[%c0_5, %c0_6], %7 {strides = array<i32>} : memref<128x64xbf16, #tpu.memory_space<vmem>>, vector<128x64xbf16>,
    %cst_7 = arith.constant 0.000000e+00 : f32
    %9 = vector.broadcast %cst_7 : f32 to vector<8x128xf32>
    %c0_8 = arith.constant 0 : index
    %c0_9 = arith.constant 0 : index
    %10 = vector.load %arg5[%c0_8, %c0_9] : memref<8x128xf32, #tpu.memory_space<vmem>>, vector<8x128xf32>
    tpu.vector_store %arg5[%c0_8, %c0_9], %9 {strides = array<i32>} : memref<8x128xf32, #tpu.memory_space<vmem>>, vector<8x128xf32>,
    %cst_10 = arith.constant dense<0.000000e+00> : vector<128xf32>
    %11 = vector.multi_reduction <add>, %5, %cst_10 [0] : vector<128x128xf32> to vector<128xf32>
    %12 = vector.shape_cast %11 : vector<128xf32> to vector<1x128xf32>
    %c0_11 = arith.constant 0 : index
    %c0_12 = arith.constant 0 : index
    %13 = vector.load %arg5[%c0_11, %c0_12] : memref<8x128xf32, #tpu.memory_space<vmem>>, vector<1x128xf32>
    tpu.vector_store %arg5[%c0_11, %c0_12], %12 {strides = array<i32>} : memref<8x128xf32, #tpu.memory_space<vmem>>, vector<1x128xf32>,
    %14 = arith.mulf %5, %5 : vector<128x128xf32>
    %cst_13 = arith.constant dense<0.000000e+00> : vector<128xf32>
    %15 = vector.multi_reduction <add>, %14, %cst_13 [0] : vector<128x128xf32> to vector<128xf32>
    %16 = vector.shape_cast %15 : vector<128xf32> to vector<1x128xf32>
    %c1 = arith.constant 1 : index
    %c0_14 = arith.constant 0 : index
    %17 = vector.load %arg5[%c1, %c0_14] : memref<8x128xf32, #tpu.memory_space<vmem>>, vector<1x128xf32>
    tpu.vector_store %arg5[%c1, %c0_14], %16 {strides = array<i32>} : memref<8x128xf32, #tpu.memory_space<vmem>>, vector<1x128xf32>,
    return
  }
  func.func @transform_0(%arg0: i32) -> (i32, i32) {
    %c0_i32 = arith.constant 0 : i32
    %c0_i32_0 = arith.constant 0 : i32
    return %arg0, %c0_i32 : i32, i32
  }
  func.func @transform_1(%arg0: i32) -> (i32, i32) {
    %c0_i32 = arith.constant 0 : i32
    %c0_i32_0 = arith.constant 0 : i32
    %c0_i32_1 = arith.constant 0 : i32
    return %c0_i32, %c0_i32_0 : i32, i32
  }
  func.func @transform_2(%arg0: i32) -> (i32, i32) {
    %c0_i32 = arith.constant 0 : i32
    %c0_i32_0 = arith.constant 0 : i32
    %c0_i32_1 = arith.constant 0 : i32
    return %c0_i32, %c0_i32_0 : i32, i32
  }
  func.func @transform_3(%arg0: i32) -> (i32, i32) {
    %c0_i32 = arith.constant 0 : i32
    %c0_i32_0 = arith.constant 0 : i32
    return %arg0, %c0_i32 : i32, i32
  }
  func.func @transform_4(%arg0: i32) -> (i32, i32) {
    %c0_i32 = arith.constant 0 : i32
    %c0_i32_0 = arith.constant 0 : i32
    return %arg0, %c0_i32 : i32, i32
  }
}

module attributes {stable_mosaic.version = 11 : i64} {
  func.func @bn_relu_pool_kernel(%arg0: i32, %arg1: memref<1x8x8x64xbf16, #tpu.memory_space<vmem>>, %arg2: memref<1x1x1x64xf32, #tpu.memory_space<vmem>>, %arg3: memref<1x1x1x64xf32, #tpu.memory_space<vmem>>, %arg4: memref<1x4x4x64xf32, #tpu.memory_space<vmem>>, %arg5: memref<9x9x64xf32, #tpu.memory_space<vmem>>, %arg6: memref<4x9x64xf32, #tpu.memory_space<vmem>>) attributes {dimension_semantics = [#tpu.dimension_semantics<parallel>], iteration_bounds = array<i64: 2>, scalar_prefetch = 0 : i64, scratch_operands = 2 : i64, tpu.core_type = #tpu.core_type<tc>, window_params = [{transform_indices = @transform_0, window_bounds = array<i64: 1, 8, 8, 64>}, {pipeline_mode = #tpu.pipeline_mode<synchronous>, transform_indices = @transform_1, window_bounds = array<i64: 1, 1, 1, 64>}, {pipeline_mode = #tpu.pipeline_mode<synchronous>, transform_indices = @transform_2, window_bounds = array<i64: 1, 1, 1, 64>}, {transform_indices = @transform_3, window_bounds = array<i64: 1, 4, 4, 64>}]} {
    %c0 = arith.constant 0 : index
    %c0_0 = arith.constant 0 : index
    %c0_1 = arith.constant 0 : index
    %c0_2 = arith.constant 0 : index
    %0 = vector.load %arg1[%c0, %c0_0, %c0_1, %c0_2] : memref<1x8x8x64xbf16, #tpu.memory_space<vmem>>, vector<1x8x8x64xbf16>
    %1 = vector.shape_cast %0 : vector<1x8x8x64xbf16> to vector<8x8x64xbf16>
    %2 = arith.extf %1 : vector<8x8x64xbf16> to vector<8x8x64xf32>
    %c0_3 = arith.constant 0 : index
    %c0_4 = arith.constant 0 : index
    %c0_5 = arith.constant 0 : index
    %c0_6 = arith.constant 0 : index
    %3 = vector.load %arg2[%c0_3, %c0_4, %c0_5, %c0_6] : memref<1x1x1x64xf32, #tpu.memory_space<vmem>>, vector<1x1x1x64xf32>
    %4 = vector.shape_cast %3 : vector<1x1x1x64xf32> to vector<1x1x64xf32>
    %5 = vector.broadcast %4 : vector<1x1x64xf32> to vector<8x8x64xf32>
    %6 = arith.mulf %2, %5 : vector<8x8x64xf32>
    %c0_7 = arith.constant 0 : index
    %c0_8 = arith.constant 0 : index
    %c0_9 = arith.constant 0 : index
    %c0_10 = arith.constant 0 : index
    %7 = vector.load %arg3[%c0_7, %c0_8, %c0_9, %c0_10] : memref<1x1x1x64xf32, #tpu.memory_space<vmem>>, vector<1x1x1x64xf32>
    %8 = vector.shape_cast %7 : vector<1x1x1x64xf32> to vector<1x1x64xf32>
    %9 = vector.broadcast %8 : vector<1x1x64xf32> to vector<8x8x64xf32>
    %10 = arith.addf %6, %9 : vector<8x8x64xf32>
    %cst = arith.constant 0.000000e+00 : f32
    %11 = vector.broadcast %cst : f32 to vector<8x8x64xf32>
    %12 = arith.maximumf %10, %11 : vector<8x8x64xf32>
    %cst_11 = arith.constant 0.000000e+00 : f32
    %13 = vector.broadcast %cst_11 : f32 to vector<9x9x64xf32>
    %c0_12 = arith.constant 0 : index
    %c0_13 = arith.constant 0 : index
    %c0_14 = arith.constant 0 : index
    %14 = vector.load %arg5[%c0_12, %c0_13, %c0_14] : memref<9x9x64xf32, #tpu.memory_space<vmem>>, vector<9x9x64xf32>
    tpu.vector_store %arg5[%c0_12, %c0_13, %c0_14], %13 {strides = array<i32>} : memref<9x9x64xf32, #tpu.memory_space<vmem>>, vector<9x9x64xf32>,
    %c1 = arith.constant 1 : index
    %c1_15 = arith.constant 1 : index
    %c0_16 = arith.constant 0 : index
    %15 = vector.load %arg5[%c1, %c1_15, %c0_16] : memref<9x9x64xf32, #tpu.memory_space<vmem>>, vector<8x8x64xf32>
    tpu.vector_store %arg5[%c1, %c1_15, %c0_16], %12 {strides = array<i32>} : memref<9x9x64xf32, #tpu.memory_space<vmem>>, vector<8x8x64xf32>,
    %c0_17 = arith.constant 0 : index
    %c0_18 = arith.constant 0 : index
    %c0_19 = arith.constant 0 : index
    %16 = tpu.strided_load %arg5[%c0_17, %c0_18, %c0_19] {strides = array<i32: 2, 1, 1>} : memref<9x9x64xf32, #tpu.memory_space<vmem>>, vector<4x9x64xf32>
    %c1_20 = arith.constant 1 : index
    %c0_21 = arith.constant 0 : index
    %c0_22 = arith.constant 0 : index
    %17 = tpu.strided_load %arg5[%c1_20, %c0_21, %c0_22] {strides = array<i32: 2, 1, 1>} : memref<9x9x64xf32, #tpu.memory_space<vmem>>, vector<4x9x64xf32>
    %18 = arith.maximumf %16, %17 : vector<4x9x64xf32>
    %c2 = arith.constant 2 : index
    %c0_23 = arith.constant 0 : index
    %c0_24 = arith.constant 0 : index
    %19 = tpu.strided_load %arg5[%c2, %c0_23, %c0_24] {strides = array<i32: 2, 1, 1>} : memref<9x9x64xf32, #tpu.memory_space<vmem>>, vector<4x9x64xf32>
    %20 = arith.maximumf %18, %19 : vector<4x9x64xf32>
    %c0_25 = arith.constant 0 : index
    %c0_26 = arith.constant 0 : index
    %c0_27 = arith.constant 0 : index
    %21 = vector.load %arg6[%c0_25, %c0_26, %c0_27] : memref<4x9x64xf32, #tpu.memory_space<vmem>>, vector<4x9x64xf32>
    tpu.vector_store %arg6[%c0_25, %c0_26, %c0_27], %20 {strides = array<i32>} : memref<4x9x64xf32, #tpu.memory_space<vmem>>, vector<4x9x64xf32>,
    %c0_28 = arith.constant 0 : index
    %c0_29 = arith.constant 0 : index
    %c0_30 = arith.constant 0 : index
    %22 = tpu.strided_load %arg6[%c0_28, %c0_29, %c0_30] {strides = array<i32: 1, 2, 1>} : memref<4x9x64xf32, #tpu.memory_space<vmem>>, vector<4x4x64xf32>
    %c0_31 = arith.constant 0 : index
    %c1_32 = arith.constant 1 : index
    %c0_33 = arith.constant 0 : index
    %23 = tpu.strided_load %arg6[%c0_31, %c1_32, %c0_33] {strides = array<i32: 1, 2, 1>} : memref<4x9x64xf32, #tpu.memory_space<vmem>>, vector<4x4x64xf32>
    %24 = arith.maximumf %22, %23 : vector<4x4x64xf32>
    %c0_34 = arith.constant 0 : index
    %c2_35 = arith.constant 2 : index
    %c0_36 = arith.constant 0 : index
    %25 = tpu.strided_load %arg6[%c0_34, %c2_35, %c0_36] {strides = array<i32: 1, 2, 1>} : memref<4x9x64xf32, #tpu.memory_space<vmem>>, vector<4x4x64xf32>
    %26 = arith.maximumf %24, %25 : vector<4x4x64xf32>
    %c0_37 = arith.constant 0 : index
    %c0_38 = arith.constant 0 : index
    %c0_39 = arith.constant 0 : index
    %c0_40 = arith.constant 0 : index
    %27 = vector.load %arg4[%c0_37, %c0_38, %c0_39, %c0_40] : memref<1x4x4x64xf32, #tpu.memory_space<vmem>>, vector<1x4x4x64xf32>
    %28 = vector.shape_cast %27 : vector<1x4x4x64xf32> to vector<4x4x64xf32>
    %29 = vector.shape_cast %26 : vector<4x4x64xf32> to vector<1x4x4x64xf32>
    tpu.vector_store %arg4[%c0_37, %c0_38, %c0_39, %c0_40], %29 {strides = array<i32>} : memref<1x4x4x64xf32, #tpu.memory_space<vmem>>, vector<1x4x4x64xf32>,
    return
  }
  func.func @transform_0(%arg0: i32) -> (i32, i32, i32, i32) {
    %c0_i32 = arith.constant 0 : i32
    %c0_i32_0 = arith.constant 0 : i32
    %c0_i32_1 = arith.constant 0 : i32
    %c0_i32_2 = arith.constant 0 : i32
    return %arg0, %c0_i32, %c0_i32_0, %c0_i32_1 : i32, i32, i32, i32
  }
  func.func @transform_1(%arg0: i32) -> (i32, i32, i32, i32) {
    %c0_i32 = arith.constant 0 : i32
    %c0_i32_0 = arith.constant 0 : i32
    %c0_i32_1 = arith.constant 0 : i32
    %c0_i32_2 = arith.constant 0 : i32
    %c0_i32_3 = arith.constant 0 : i32
    return %c0_i32, %c0_i32_0, %c0_i32_1, %c0_i32_2 : i32, i32, i32, i32
  }
  func.func @transform_2(%arg0: i32) -> (i32, i32, i32, i32) {
    %c0_i32 = arith.constant 0 : i32
    %c0_i32_0 = arith.constant 0 : i32
    %c0_i32_1 = arith.constant 0 : i32
    %c0_i32_2 = arith.constant 0 : i32
    %c0_i32_3 = arith.constant 0 : i32
    return %c0_i32, %c0_i32_0, %c0_i32_1, %c0_i32_2 : i32, i32, i32, i32
  }
  func.func @transform_3(%arg0: i32) -> (i32, i32, i32, i32) {
    %c0_i32 = arith.constant 0 : i32
    %c0_i32_0 = arith.constant 0 : i32
    %c0_i32_1 = arith.constant 0 : i32
    %c0_i32_2 = arith.constant 0 : i32
    return %arg0, %c0_i32, %c0_i32_0, %c0_i32_1 : i32, i32, i32, i32
  }
}

</mosaic_0001>

<bundles_post_ra>
// kernel: conv1_forward.3
= control target key start
LH: loop header
LB: loop body
LE: loop exit
PB: predicated region body
PF: predicated region fallthrough
CT: control target
= control target key end

     0   :  { %8 = vsyncpa [#allocation5], 0  ;;  %s731_s0 = inlined_call_operand.vmem [shape: bf16[2,8,8,64], index: 0, kind: input, shape index: {}]   ;;  %s732_s1 = inlined_call_operand.vmem [shape: f32[1,1,1,64], index: 1, kind: input, shape index: {}]   ;;  %s733_s2 = inlined_call_operand.vmem [shape: f32[1,1,1,64], index: 2, kind: input, shape index: {}]   ;;  %s734_s3 = inlined_call_operand.hbm [shape: f32[2,4,4,64], index: 3, kind: output, shape index: {}]  }
   0x1   :  { %10 = vsyncpa [#allocation5 + $0x1], 0  ;;  %s578_s12 = smov 0   ;;  %s580_s13 = smov 0  }
   0x2   :  { %s582_s14 = smov 0   ;;  %s584_s15 = smov 0  }
   0x3 LB: > { %s599_s16 = sadd.s32 4294967295, %s552_s15   ;;  %s413_s17 = sadd.s32 4294967294, %s552_s15   ;;  %s552_s15 = sphi %s584_s15, %s740_s15   ;;  %s548_s14 = sphi %s582_s14, %s739_s14   ;;  %s544_s13 = sphi %s580_s13, %s738_s13   ;;  %s540_s12 = sphi %s578_s12, %s737_s12  }
   0x4   : > { %s603_s18 = sadd.s32 1, %s552_s15   ;;  %s91_s19 = sadd.s32 1, %s548_s14 }
   0x5   : > { %s88_s20 = ssub.s32 %s552_s15, %s603_s18  ;;  %p101_p0 = scmp.ne.s32.totalorder %s548_s14, %s544_s13 }
   0x6   : > { %p89_p1 = scmp.eq.s32.totalorder %s88_s20, 0  ;;  %p102_p2 = scmp.eq.s32.totalorder %s599_s16, 1 }
   0x7   : > { %p107_p3 = scmp.ne.s32.totalorder %s544_s13, %s540_s12  ;;  %p108_p4 = scmp.eq.s32.totalorder %s413_s17, 1 }
   0x8   : > { %s614_s21 = scalar_select %p89_p1, %s548_s14, %s91_s19  }
   0x9   : > { %p616_p5 = por %p102_p2, %p101_p0  ;;  %p620_p6 = por %p108_p4, %p107_p3 }
   0xa   : > { %p416_p7 = scmp.ge.s32.totalorder %s552_s15, 1  ;;  %p140_p8 = scmp.lt.s32.totalorder %s552_s15, 3 }
   0xc   : > { %p141_p9 = pnand %p416_p7, %p140_p8 }
   0xd   : > { %vm223_vm0 = vcmask (!%p141_p9), 523264   ;;  %vm225_vm1 = vcmask (!%p141_p9), 516096   ;;  %p164_p10 = scmp.lt.s32.totalorder (!%p141_p9), %s599_s16, 1  ;;  %v554_v0 = vmov (!%p141_p9), 0.0   ;;  %v420_v1 = vld [vmem:[%s732_s1] ss:$0 sm:$0xff] (!%p141_p9) }
   0xe   : > { %144 = sbr.rel (%p141_p9) target bundleno = 79 (0x4f), region = 32  ;;  %227 = vst.msk [vmem:[#allocation2 + $0x10] sm:$0xff] (!%p141_p9), %vm223_vm0, %v554_v0  ;;  %224 = vst.msk [vmem:[#allocation2] sm:$0xff] (!%p141_p9), %vm223_vm0, %v554_v0  ;;  %v421_v10 = vld [vmem:[%s733_s2] ss:$0 sm:$0xff] (!%p141_p9)  ;;  %s161_s6 = sand.u32 (!%p141_p9), 1, %s544_s13  }
   0xf   : > { %229 = vst.msk [vmem:[#allocation2 + $0x20] sm:$0xff] (!%p141_p9), %vm223_vm0, %v554_v0  ;;  %231 = vst.msk [vmem:[#allocation2 + $0x30] sm:$0xff] (!%p141_p9), %vm223_vm0, %v554_v0  ;;  %s417_s7 = sshll.u32 (!%p141_p9), %s161_s6, 4  ;;  %vm332_vm2 = vcmask (!%p141_p9), 519168   ;;  %s428_s10 = sshll.u32 (!%p141_p9), %s599_s16, 8 }
  0x10   : > { %233 = vst.msk [vmem:[#allocation2 + $0x40] sm:$0xff] (!%p141_p9), %vm223_vm0, %v554_v0  ;;  %235 = vst.msk [vmem:[#allocation2 + $0x50] sm:$0xff] (!%p141_p9), %vm223_vm0, %v554_v0  ;;  %s163_s8 = scalar_lea.vmem (!%p141_p9), [#allocation4], %s417_s7  ;;  %s684_s17 = scalar_lea.hbm (!%p141_p9), %s734_s3, %s428_s10 }
  0x11   : > { %237 = vst.msk [vmem:[#allocation2 + $0x60] sm:$0xff] (!%p141_p9), %vm223_vm0, %v554_v0  ;;  %239 = vst.msk [vmem:[#allocation2 + $0x70] sm:$0xff] (!%p141_p9), %vm223_vm0, %v554_v0  ;;  %s351_s9 = sshll.u32 (!%p141_p9), %s163_s8, 4  ;;  %s690_s19 = scalar_lea.sflag (!%p141_p9), [#allocation5], %s161_s6  ;;  %s678_s9 = int_to_ptr.vmem [resolvable:$true] %s351_s9 }
  0x12   : > { %241 = vst.msk [vmem:[#allocation2 + $0x80] sm:$0xff] (!%p141_p9), %vm223_vm0, %v554_v0  ;;  %s490_s20 = scalar_lea.vmem (!%p141_p9), %s678_s9, 256 }
  0x13   : > { %228 = vst.msk [vmem:[#allocation2 + $0x18] sm:$0x1] (!%p141_p9), %vm225_vm1, %v554_v0  ;;  %226 = vst.msk [vmem:[#allocation2 + $0x8] sm:$0x1] (!%p141_p9), %vm225_vm1, %v554_v0  ;;  %p491_p11 = scmp.ne.s32.totalorder (!%p141_p9), %s678_s9, %s490_s20 }
  0x14   : > { %230 = vst.msk [vmem:[#allocation2 + $0x28] sm:$0x1] (!%p141_p9), %vm225_vm1, %v554_v0  ;;  %232 = vst.msk [vmem:[#allocation2 + $0x38] sm:$0x1] (!%p141_p9), %vm225_vm1, %v554_v0 }
  0x15   : > { %234 = vst.msk [vmem:[#allocation2 + $0x48] sm:$0x1] %vm225_vm1, %v554_v0  ;;  %236 = vst.msk [vmem:[#allocation2 + $0x58] sm:$0x1] %vm225_vm1, %v554_v0  ;;  %s165_s24 = scalar_select %p164_p10, %s599_s16, 1  ;;  %v252_v39 = vld [vmem:[#allocation2] sm:$0xff] }
  0x16   : > { %238 = vst.msk [vmem:[#allocation2 + $0x68] sm:$0x1] %vm225_vm1, %v554_v0  ;;  %240 = vst.msk [vmem:[#allocation2 + $0x78] sm:$0x1] %vm225_vm1, %v554_v0  ;;  %p492_p12 = pnand %p491_p11, %p616_p5 }
  0x17   : > { %242 = vst.msk [vmem:[#allocation2 + $0x88] sm:$0x1] %vm225_vm1, %v554_v0  ;;  %s427_s25 = sshll.u32 %s165_s24, 5  ;;  %s555_s24 = smov [#allocation4]  }
  0x18   : > { %s168_s28 = scalar_lea.vmem %s731_s0, %s427_s25  ;;  %p493_p13 = pneg %p492_p12 }
  0x19   : > { %v430_v2 = vld [vmem:[%s168_s28] sm:$0xff]   ;;  %v445_v3 = vld [vmem:[%s168_s28 + $0x8] sm:$0xff]   ;;  %v446_v4 = vld [vmem:[%s168_s28 + $0x10] sm:$0xff]   ;;  %s494_s25 = sshll.u32 %s555_s24, 4  ;;  %s495_s25 = int_to_ptr.vmem [resolvable:$false] %s494_s25 }
  0x1a   : > { %v431_v5 = vunpack.c.l.bf16 %v430_v2  ;;  %v432_v6 = vunpack.c.h.bf16 %v430_v2  ;;  %v435_v7 = vunpack.c.l.bf16 %v445_v3  ;;  %v436_v8 = vunpack.c.h.bf16 %v445_v3  ;;  %v447_v9 = vld [vmem:[%s168_s28 + $0x18] sm:$0xff]   ;;  %v253_v40 = vld [vmem:[#allocation2 + $0x8] sm:$0x1]  ;;  %s496_s26 = scalar_lea.vmem %s495_s25, 512  ;;  %p497_p0 = scmp.lt.s32.totalorder %s678_s9, %s495_s25 }
  0x1b   : > { %v439_v11 = vunpack.c.l.bf16 %v446_v4  ;;  %v440_v12 = vunpack.c.h.bf16 %v446_v4  ;;  %v443_v13 = vunpack.c.l.bf16 %v447_v9  ;;  %v444_v14 = vunpack.c.h.bf16 %v447_v9  ;;  %p498_p1 = scmp.lt.s32.totalorder %s496_s26, %s490_s20 }
  0x1c   : > { %v192_v15 = vmul.f32 %v431_v5, %v420_v1  ;;  %v193_v16 = vmul.f32 %v432_v6, %v420_v1  ;;  %v194_v17 = vmul.f32 %v435_v7, %v420_v1  ;;  %v195_v18 = vmul.f32 %v436_v8, %v420_v1 }
  0x1d   : > { %v196_v19 = vmul.f32 %v439_v11, %v420_v1  ;;  %v197_v20 = vmul.f32 %v440_v12, %v420_v1  ;;  %v198_v21 = vmul.f32 %v443_v13, %v420_v1  ;;  %v199_v22 = vmul.f32 %v444_v14, %v420_v1  ;;  %p499_p2 = por %p498_p1, %p497_p0 }
  0x1e   : > { %v207_v23 = vadd.f32 %v421_v10, %v192_v15  ;;  %v208_v24 = vadd.f32 %v421_v10, %v193_v16  ;;  %v209_v25 = vadd.f32 %v421_v10, %v194_v17  ;;  %v210_v26 = vadd.f32 %v421_v10, %v195_v18 }
  0x1f   : > { %v211_v27 = vadd.f32 %v421_v10, %v196_v19  ;;  %v212_v28 = vadd.f32 %v421_v10, %v197_v20  ;;  %v213_v29 = vadd.f32 %v421_v10, %v198_v21  ;;  %v214_v30 = vadd.f32 %v421_v10, %v199_v22  ;;  %p500_p3 = pnand %p499_p2, %p493_p13 }
  0x20   : > { %v215_v31 = vmax.f32 %v207_v23, 0.0  ;;  %v216_v32 = vmax.f32 %v208_v24, 0.0  ;;  %v217_v33 = vmax.f32 %v209_v25, 0.0  ;;  %v218_v34 = vmax.f32 %v210_v26, 0.0 }
  0x21   : > { %v219_v35 = vmax.f32 %v211_v27, 0.0  ;;  %v220_v36 = vmax.f32 %v212_v28, 0.0  ;;  %v221_v37 = vmax.f32 %v213_v29, 0.0  ;;  %v222_v38 = vmax.f32 %v214_v30, 0.0 }
  0x22   : > { %244 = vst.msk [vmem:[#allocation2 + $0x11] sm:$0xff] %vm223_vm0, %v215_v31  ;;  %245 = vst.msk [vmem:[#allocation2 + $0x21] sm:$0xff] %vm223_vm0, %v216_v32 }
  0x23   : > { %246 = vst.msk [vmem:[#allocation2 + $0x31] sm:$0xff] %vm223_vm0, %v217_v33  ;;  %247 = vst.msk [vmem:[#allocation2 + $0x41] sm:$0xff] %vm223_vm0, %v218_v34 }
  0x24   : > { %248 = vst.msk [vmem:[#allocation2 + $0x51] sm:$0xff] %vm223_vm0, %v219_v35  ;;  %249 = vst.msk [vmem:[#allocation2 + $0x61] sm:$0xff] %vm223_vm0, %v220_v36 }
  0x25   : > { %250 = vst.msk [vmem:[#allocation2 + $0x71] sm:$0xff] %vm223_vm0, %v221_v37  ;;  %251 = vst.msk [vmem:[#allocation2 + $0x81] sm:$0xff] %vm223_vm0, %v222_v38 }
  0x29   : > { %v260_v41 = vld [vmem:[#allocation2 + $0x10] sm:$0xff]  ;;  %v277_v42 = vld [vmem:[#allocation2 + $0x20] sm:$0xff]  ;;  %v261_v43 = vld [vmem:[#allocation2 + $0x18] sm:$0x1] }
  0x2a   : > { %v268_v44 = vmax.f32 %v252_v39, %v260_v41  ;;  %v269_v45 = vmax.f32 %v253_v40, %v261_v43  ;;  %v262_v46 = vld [vmem:[#allocation2 + $0x30] sm:$0xff]  ;;  %v279_v47 = vld [vmem:[#allocation2 + $0x40] sm:$0xff]  ;;  %v278_v48 = vld [vmem:[#allocation2 + $0x28] sm:$0x1] }
  0x2b   : > { %v270_v49 = vmax.f32 %v277_v42, %v262_v46  ;;  %v255_v50 = vld [vmem:[#allocation2 + $0x28] sm:$0x1]  ;;  %v263_v51 = vld [vmem:[#allocation2 + $0x38] sm:$0x1]  ;;  %v264_v55 = vld [vmem:[#allocation2 + $0x50] sm:$0xff] }
  0x2c   : > { %v285_v52 = vmax.f32 %v268_v44, %v277_v42  ;;  %v286_v53 = vmax.f32 %v269_v45, %v278_v48  ;;  %v271_v54 = vmax.f32 %v255_v50, %v263_v51  ;;  %v281_v56 = vld [vmem:[#allocation2 + $0x60] sm:$0xff]  ;;  %v257_v57 = vld [vmem:[#allocation2 + $0x48] sm:$0x1]  ;;  %v272_v60 = vmax.f32 %v279_v47, %v264_v55  ;;  %v265_v61 = vld [vmem:[#allocation2 + $0x58] sm:$0x1] }
  0x2d   : > { %v287_v58 = vmax.f32 %v270_v49, %v279_v47  ;;  %v280_v59 = vld [vmem:[#allocation2 + $0x48] sm:$0x1]  ;;  %v266_v62 = vld [vmem:[#allocation2 + $0x70] sm:$0xff]  ;;  %v273_v0 = vmax.f32 %v257_v57, %v265_v61  ;;  %v283_v2 = vld [vmem:[#allocation2 + $0x80] sm:$0xff] }
  0x2e   : > { %293 = vst.msk [vmem:[#allocation3] sm:$0xff] %vm223_vm0, %v285_v52  ;;  %v288_v63 = vmax.f32 %v271_v54, %v280_v59  ;;  %v274_v1 = vmax.f32 %v281_v56, %v266_v62  ;;  %v259_v3 = vld [vmem:[#allocation2 + $0x68] sm:$0x1]  ;;  %v267_v4 = vld [vmem:[#allocation2 + $0x78] sm:$0x1]  ;;  %v289_v5 = vmax.f32 %v272_v60, %v281_v56 }
  0x2f   : > { %294 = vst.msk [vmem:[#allocation3 + $0x8] sm:$0x1] %vm225_vm1, %v286_v53  ;;  %v282_v6 = vld [vmem:[#allocation2 + $0x68] sm:$0x1]  ;;  %v275_v7 = vmax.f32 %v259_v3, %v267_v4 }
  0x30   : > { %295 = vst.msk [vmem:[#allocation3 + $0x10] sm:$0xff] %vm223_vm0, %v287_v58  ;;  %v284_v8 = vld [vmem:[#allocation2 + $0x88] sm:$0x1]  ;;  %v290_v9 = vmax.f32 %v273_v0, %v282_v6  ;;  %v291_v10 = vmax.f32 %v274_v1, %v283_v2  ;;  %297 = vst.msk [vmem:[#allocation3 + $0x20] sm:$0xff] %vm223_vm0, %v289_v5 }
  0x31   : > { %296 = vst.msk [vmem:[#allocation3 + $0x18] sm:$0x1] %vm225_vm1, %v288_v63  ;;  %v292_v11 = vmax.f32 %v275_v7, %v284_v8 }
  0x32   : > { %298 = vst.msk [vmem:[#allocation3 + $0x28] sm:$0x1] %vm225_vm1, %v290_v9 }
  0x33   : > { %299 = vst.msk [vmem:[#allocation3 + $0x30] sm:$0xff] %vm223_vm0, %v291_v10 }
  0x34   : > { %300 = vst.msk [vmem:[#allocation3 + $0x38] sm:$0x1] %vm225_vm1, %v292_v11 }
  0x35   : > { %v301_v12 = vld [vmem:[#allocation3] ss:$2 sm:$0xf]  ;;  %v309_v13 = vld [vmem:[#allocation3 + $0x1] ss:$2 sm:$0xf] }
  0x36   : > { %v316_v14 = vmax.f32 %v301_v12, %v309_v13  ;;  %v321_v16 = vld [vmem:[#allocation3 + $0x2] ss:$2 sm:$0xf] }
  0x37   : > { %v303_v15 = vld [vmem:[#allocation3 + $0x10] ss:$2 sm:$0xf]  ;;  %v311_v17 = vld [vmem:[#allocation3 + $0x11] ss:$2 sm:$0xf] }
  0x38   : > { %v328_v18 = vmax.f32 %v316_v14, %v321_v16  ;;  %v317_v19 = vmax.f32 %v303_v15, %v311_v17  ;;  %v305_v20 = vld [vmem:[#allocation3 + $0x20] ss:$2 sm:$0xf]  ;;  %v313_v21 = vld [vmem:[#allocation3 + $0x21] ss:$2 sm:$0xf] }
  0x39   : > { %v323_v22 = vld [vmem:[#allocation3 + $0x12] ss:$2 sm:$0xf]  ;;  %v318_v23 = vmax.f32 %v305_v20, %v313_v21  ;;  %v325_v26 = vld [vmem:[#allocation3 + $0x22] ss:$2 sm:$0xf] }
  0x3a   : > { %v307_v24 = vld [vmem:[#allocation3 + $0x30] ss:$2 sm:$0xf]  ;;  %333 = vst.msk [vmem:[%s163_s8] sm:$0xf] %vm332_vm2, %v328_v18  ;;  %v329_v25 = vmax.f32 %v317_v19, %v323_v22 }
  0x3b   : > { %v315_v27 = vld [vmem:[#allocation3 + $0x31] ss:$2 sm:$0xf]  ;;  %v330_v28 = vmax.f32 %v318_v23, %v325_v26  ;;  %v327_v30 = vld [vmem:[#allocation3 + $0x32] ss:$2 sm:$0xf] }
  0x3c   : > { %v319_v29 = vmax.f32 %v307_v24, %v315_v27  ;;  %334 = vst.msk [vmem:[%s163_s8 + $0x4] sm:$0xf] %vm332_vm2, %v329_v25 }
  0x3d   : > { %335 = vst.msk [vmem:[%s163_s8 + $0x8] sm:$0xf] %vm332_vm2, %v330_v28 }
  0x3e   : > { %v331_v31 = vmax.f32 %v319_v29, %v327_v30 }
  0x40   : > { %336 = vst.msk [vmem:[%s163_s8 + $0xc] sm:$0xf] %vm332_vm2, %v331_v31 }
  0x41   : > { %503 = shalt.err (!%p500_p3)
}
  0x42   : > { %s504_s27 = scalar_lea.hbm %s684_s17, 256  ;;  %s508_s30 = scalar_lea.hbm %s734_s3, 512 }
  0x43   : > { %p505_p4 = scmp.ne.s32.totalorder %s684_s17, %s504_s27  ;;  %p509_p9 = scmp.lt.u32.totalorder %s684_s17, %s734_s3 }
  0x44   : > { %p510_p10 = scmp.lt.u32.totalorder %s508_s30, %s504_s27  ;;  %p512_p12 = scmp.lt.u32.totalorder %s504_s27, %s684_s17 }
  0x45   : > { %p506_p7 = pnand %p505_p4, %p616_p5 }
  0x46   : > { %p511_p11 = por %p510_p10, %p509_p9 }
  0x47   : > { %p507_p8 = pneg %p506_p7 }
  0x48   : > { %p513_p13 = por %p512_p12, %p511_p11 }
  0x4a   : > { %p514_p0 = pnand %p513_p13, %p507_p8 }
  0x4c   : > { %517 = shalt.err (!%p514_p0)
}
  0x4d   : > { %s556_s6 = smov 64   ;;  %s557_s7 = smov 4  }
  0x4e   : > { %448 = dma.vmem_to_hbm [thread:$0]  (%p616_p5), %s678_s9, 256, %s684_s17, %s690_s19, %s556_s6, %s556_s6, %s557_s7  }
  0x4f PF: > { %p454_p1 = scmp.ge.s32.totalorder %s552_s15, 2  ;;  %s366_s8 = sand.u32 1, %s540_s12  }
  0x50   : > { %s367_s10 = scalar_lea.sflag [#allocation5], %s366_s8 }
  0x51   : > { %p451_p2 = pnand %p454_p1, %p620_p6 }
  0x53   : > { %535 = dma.done.wait (!%p451_p2), %s367_s10, 256  }
  0x54   : > { %537 = vsyncadd (!%p451_p2), %s367_s10, 4294967040  ;;  %p13_p3 = scmp.ge.s32.totalorder %s603_s18, 4   ;;  %s737_s12 = smov %s544_s13 }
  0x55   : > { %s738_s13 = smov %s548_s14  ;;  %s739_s14 = smov %s614_s21 }
  0x56   : > { %s740_s15 = smov %s603_s18  ;;  %15 = sbr.rel (!%p13_p3) target bundleno = 3 (0x3), region = 80 }
  0x5d   :  { %372 = vsyncpa [#allocation5], 1 }
  0x5e   :  { %374 = vsyncpa [#allocation5 + $0x1], 1 }

// kernel: conv1_forward.2
= control target key start
LH: loop header
LB: loop body
LE: loop exit
PB: predicated region body
PF: predicated region fallthrough
CT: control target
= control target key end

     0   :  { %v681_v32 = vmov 0.0   ;;  %vm409_vm0 = vcmask 519168   ;;  %s925_s1 = inlined_call_operand.vmem [shape: bf16[256,128], index: 1, kind: input, shape index: {}]   ;;  %s926_s0 = inlined_call_operand.vmem [shape: bf16[128,256], index: 0, kind: input, shape index: {}]   ;;  %s927_s4 = inlined_call_operand.vmem [shape: f32[8,128], index: 4, kind: output, shape index: {1}]   ;;  %s928_s2 = inlined_call_operand.vmem [shape: f32[1,128], index: 2, kind: input, shape index: {}]   ;;  %s929_s3 = inlined_call_operand.vmem [shape: bf16[128,64], index: 3, kind: output, shape index: {0}]  }
   0x1   :  { %v641_v0 = vld [vmem:[%s925_s1 + $0x40] sm:$0xff]   ;;  %v643_v2 = vld [vmem:[%s925_s1 + $0x48] sm:$0xff]   ;;  %v645_v4 = vld [vmem:[%s925_s1 + $0x50] sm:$0xff]   ;;  %426 = vst [vmem:[%s927_s4] sm:$0xff] %v681_v32 }
   0x2   :  { %v642_v1 = vld [vmem:[%s925_s1] sm:$0xff]   ;;  %560 = vmatprep.subr.bf16.mxu0 %v641_v0  ;;  %624 = vmatprep.subr.bf16.mxu1 %v641_v0  ;;  %v644_v3 = vld [vmem:[%s925_s1 + $0x8] sm:$0xff]   ;;  %v646_v5 = vld [vmem:[%s925_s1 + $0x10] sm:$0xff]  }
   0x3   :  { %561 = vmatpush3.bf16.msra.mxu0 %v642_v1  ;;  %632 = vmatpush3.bf16.msra.mxu1 %v642_v1  ;;  %v647_v6 = vld [vmem:[%s925_s1 + $0x58] sm:$0xff]   ;;  %v649_v8 = vld [vmem:[%s925_s1 + $0x60] sm:$0xff]   ;;  %v651_v10 = vld [vmem:[%s925_s1 + $0x68] sm:$0xff]  }
   0x4   :  { %562 = vmatprep.subr.bf16.mxu0 %v643_v2  ;;  %625 = vmatprep.subr.bf16.mxu1 %v643_v2  ;;  %v648_v7 = vld [vmem:[%s925_s1 + $0x18] sm:$0xff]   ;;  %v650_v9 = vld [vmem:[%s925_s1 + $0x20] sm:$0xff]   ;;  %v652_v12 = vld [vmem:[%s925_s1 + $0x28] sm:$0xff]  }
   0x5   :  { %v659_v11 = vld [vmem:[%s926_s0 + $0x4] ss:$8 sps:$4 sm:$0xff]   ;;  %v653_v14 = vld [vmem:[%s925_s1 + $0x70] sm:$0xff]   ;;  %v655_v16 = vld [vmem:[%s925_s1 + $0x78] sm:$0xff]  }
   0x6   :  { %v665_v13 = vld [vmem:[%s926_s0 + $0x44] ss:$8 sps:$4 sm:$0xff]   ;;  %280 = vmatprep.mubr.bf16.mxu0 %v659_v11  ;;  %v654_v15 = vld [vmem:[%s925_s1 + $0x30] sm:$0xff]   ;;  %v656_v17 = vld [vmem:[%s925_s1 + $0x38] sm:$0xff]  }
   0x7   :  { %563 = vmatpush3.bf16.msra.mxu0 %v644_v3  ;;  %633 = vmatpush3.bf16.msra.mxu1 %v644_v3  ;;  %v657_v18 = vld [vmem:[%s926_s0] ss:$8 sps:$4 sm:$0xff]   ;;  %v660_v20 = vld [vmem:[%s926_s0 + $0x14] ss:$8 sps:$4 sm:$0xff]   ;;  %v662_v22 = vld [vmem:[%s926_s0 + $0x10] ss:$8 sps:$4 sm:$0xff]  }
   0x8   :  { %564 = vmatprep.subr.bf16.mxu0 %v645_v4  ;;  %626 = vmatprep.subr.bf16.mxu1 %v645_v4  ;;  %v663_v19 = vld [vmem:[%s926_s0 + $0x40] ss:$8 sps:$4 sm:$0xff]   ;;  %v669_v21 = vld [vmem:[%s926_s0 + $0x54] ss:$8 sps:$4 sm:$0xff]   ;;  %v671_v23 = vld [vmem:[%s926_s0 + $0x50] ss:$8 sps:$4 sm:$0xff]  }
   0x9   :  { %312 = vmatprep.mubr.bf16.mxu1 %v665_v13  ;;  %v666_v24 = vld [vmem:[%s926_s0 + $0x24] ss:$8 sps:$4 sm:$0xff]   ;;  %v668_v26 = vld [vmem:[%s926_s0 + $0x20] ss:$8 sps:$4 sm:$0xff]   ;;  %v672_v28 = vld [vmem:[%s926_s0 + $0x34] ss:$8 sps:$4 sm:$0xff]  }
   0xa   :  { %v675_v25 = vld [vmem:[%s926_s0 + $0x64] ss:$8 sps:$4 sm:$0xff]   ;;  %v677_v27 = vld [vmem:[%s926_s0 + $0x60] ss:$8 sps:$4 sm:$0xff]   ;;  %v678_v29 = vld [vmem:[%s926_s0 + $0x74] ss:$8 sps:$4 sm:$0xff]  }
   0xb   :  { %565 = vmatpush3.bf16.msra.mxu0 %v646_v5  ;;  %634 = vmatpush3.bf16.msra.mxu1 %v646_v5  ;;  %v674_v30 = vld [vmem:[%s926_s0 + $0x30] ss:$8 sps:$4 sm:$0xff]   ;;  %v809_v35 = vld [vmem:[%s928_s2] ss:$0 sm:$0xff] }
   0xc   :  { %566 = vmatprep.subr.bf16.mxu0 %v647_v6  ;;  %627 = vmatprep.subr.bf16.mxu1 %v647_v6  ;;  %v680_v31 = vld [vmem:[%s926_s0 + $0x70] ss:$8 sps:$4 sm:$0xff]  }
   0xf   :  { %567 = vmatpush3.bf16.msra.mxu0 %v648_v7  ;;  %635 = vmatpush3.bf16.msra.mxu1 %v648_v7 }
  0x10   :  { %568 = vmatprep.subr.bf16.mxu0 %v649_v8  ;;  %628 = vmatprep.subr.bf16.mxu1 %v649_v8 }
  0x13   :  { %569 = vmatpush3.bf16.msra.mxu0 %v650_v9  ;;  %636 = vmatpush3.bf16.msra.mxu1 %v650_v9 }
  0x14   :  { %570 = vmatprep.subr.bf16.mxu0 %v651_v10  ;;  %629 = vmatprep.subr.bf16.mxu1 %v651_v10 }
  0x17   :  { %571 = vmatpush3.bf16.msra.mxu0 %v652_v12  ;;  %637 = vmatpush3.bf16.msra.mxu1 %v652_v12 }
  0x18   :  { %572 = vmatprep.subr.bf16.mxu0 %v653_v14  ;;  %630 = vmatprep.subr.bf16.mxu1 %v653_v14 }
  0x1b   :  { %573 = vmatpush3.bf16.msra.mxu0 %v654_v15  ;;  %638 = vmatpush3.bf16.msra.mxu1 %v654_v15 }
  0x1c   :  { %574 = vmatprep.subr.bf16.mxu0 %v655_v16  ;;  %631 = vmatprep.subr.bf16.mxu1 %v655_v16 }
  0x1f   :  { %575 = vmatpush3.bf16.msra.mxu0 %v656_v17  ;;  %639 = vmatpush3.bf16.msra.mxu1 %v656_v17 }
  0x22   :  { %281 = vmatmul.mubr.bf16.vlgmr.msra.gmra.mrb[0].mxu0 %v657_v18  ;;  %313 = vmatmul.mubr.bf16.vlgmr.msra.gmra.mrb[0].mxu1 %v663_v19 }
  0x23   :  { %288 = vmatprep.mubr.bf16.mxu0 %v660_v20  ;;  %320 = vmatprep.mubr.bf16.mxu1 %v669_v21 }
  0x2a   :  { %289 = vmatmul.mubr.bf16.gmra.mrb[4].mxu0 %v662_v22  ;;  %321 = vmatmul.mubr.bf16.gmra.mrb[4].mxu1 %v671_v23 }
  0x2b   :  { %296 = vmatprep.mubr.bf16.mxu0 %v666_v24  ;;  %328 = vmatprep.mubr.bf16.mxu1 %v675_v25 }
  0x32   :  { %297 = vmatmul.mubr.bf16.gmra.mrb[8].mxu0 %v668_v26  ;;  %329 = vmatmul.mubr.bf16.gmra.mrb[8].mxu1 %v677_v27 }
  0x33   :  { %304 = vmatprep.mubr.bf16.mxu0 %v672_v28  ;;  %336 = vmatprep.mubr.bf16.mxu1 %v678_v29 }
  0x3a   :  { %305 = vmatmul.mubr.bf16.gmra.mrb[12].mxu0 %v674_v30  ;;  %337 = vmatmul.mubr.bf16.gmra.mrb[12].mxu1 %v680_v31 }
  0xf5   :  { %v576_v33 = vpop.f32.mrb[0].mxu0  ;;  %v600_v34 = vpop.f32.mrb[0].mxu1 }
  0xf6   :  { %v577_v36 = vpop.f32.mrb[1].mxu0  ;;  %v601_v37 = vpop.f32.mrb[1].mxu1 }
  0xf7   :  { %v578_v38 = vadd.f32 %v577_v36, %v576_v33  ;;  %v579_v39 = vpop.f32.mrb[2].mxu0  ;;  %v602_v40 = vadd.f32 %v601_v37, %v600_v34  ;;  %v603_v41 = vpop.f32.mrb[2].mxu1 }
  0xf8   :  { %v580_v42 = vpop.f32.mrb[3].mxu0  ;;  %v604_v43 = vpop.f32.mrb[3].mxu1 }
  0xf9   :  { %v283_v44 = vadd.f32 %v578_v38, %v809_v35  ;;  %v581_v45 = vadd.f32 %v580_v42, %v579_v39  ;;  %v813_v46 = vadd.f32 %v602_v40, %v809_v35  ;;  %v605_v47 = vadd.f32 %v604_v43, %v603_v41 }
  0xfb   :  { %v544_v48 = vpack.c.bf16 %v283_v44, %v283_v44  ;;  %v286_v49 = vadd.f32 %v581_v45, %v809_v35  ;;  %v552_v50 = vpack.c.bf16 %v813_v46, %v813_v46  ;;  %v819_v51 = vadd.f32 %v605_v47, %v809_v35 }
  0xfc   :  { %v449_v52 = vmul.f32 %v283_v44, %v283_v44 }
  0xfd   :  { %410 = vst.msk [vmem:[%s929_s3] sm:$0xf] %vm409_vm0, %v544_v48  ;;  %v545_v53 = vpack.c.bf16 %v286_v49, %v286_v49  ;;  %v427_v54 = vadd.f32 %v286_v49, %v283_v44  ;;  %v450_v55 = vmul.f32 %v286_v49, %v286_v49  ;;  %v582_v56 = vpop.f32.mrb[4].mxu0  ;;  %418 = vst.msk [vmem:[%s929_s3 + $0x20] sm:$0xf] %vm409_vm0, %v552_v50  ;;  %v606_v57 = vpop.f32.mrb[4].mxu1 }
  0xfe   :  { %v583_v58 = vpop.f32.mrb[5].mxu0  ;;  %v553_v59 = vpack.c.bf16 %v819_v51, %v819_v51  ;;  %v607_v60 = vpop.f32.mrb[5].mxu1 }
  0xff   :  { %411 = vst.msk [vmem:[%s929_s3 + $0x4] sm:$0xf] %vm409_vm0, %v545_v53  ;;  %v465_v61 = vadd.f32 %v450_v55, %v449_v52  ;;  %v584_v62 = vadd.f32 %v583_v58, %v582_v56  ;;  %v585_v63 = vpop.f32.mrb[6].mxu0  ;;  %v608_v0 = vadd.f32 %v607_v60, %v606_v57  ;;  %v609_v1 = vpop.f32.mrb[6].mxu1 }
 0x100   :  { %v586_v2 = vpop.f32.mrb[7].mxu0  ;;  %419 = vst.msk [vmem:[%s929_s3 + $0x24] sm:$0xf] %vm409_vm0, %v553_v59  ;;  %v610_v3 = vpop.f32.mrb[7].mxu1 }
 0x101   :  { %v291_v4 = vadd.f32 %v584_v62, %v809_v35  ;;  %v587_v5 = vadd.f32 %v586_v2, %v585_v63  ;;  %v841_v6 = vadd.f32 %v608_v0, %v809_v35  ;;  %v611_v7 = vadd.f32 %v610_v3, %v609_v1 }
 0x103   :  { %v546_v8 = vpack.c.bf16 %v291_v4, %v291_v4  ;;  %v428_v9 = vadd.f32 %v427_v54, %v291_v4  ;;  %v451_v10 = vmul.f32 %v291_v4, %v291_v4  ;;  %v294_v11 = vadd.f32 %v587_v5, %v809_v35 }
 0x104   :  { %v554_v12 = vpack.c.bf16 %v841_v6, %v841_v6  ;;  %v847_v13 = vadd.f32 %v611_v7, %v809_v35 }
 0x105   :  { %412 = vst.msk [vmem:[%s929_s3 + $0x8] sm:$0xf] %vm409_vm0, %v546_v8  ;;  %v466_v14 = vadd.f32 %v465_v61, %v451_v10  ;;  %v547_v15 = vpack.c.bf16 %v294_v11, %v294_v11  ;;  %v429_v16 = vadd.f32 %v428_v9, %v294_v11  ;;  %v452_v17 = vmul.f32 %v294_v11, %v294_v11  ;;  %v588_v18 = vpop.f32.mrb[8].mxu0  ;;  %v612_v19 = vpop.f32.mrb[8].mxu1 }
 0x106   :  { %v589_v20 = vpop.f32.mrb[9].mxu0  ;;  %420 = vst.msk [vmem:[%s929_s3 + $0x28] sm:$0xf] %vm409_vm0, %v554_v12  ;;  %v555_v21 = vpack.c.bf16 %v847_v13, %v847_v13  ;;  %v613_v22 = vpop.f32.mrb[9].mxu1  ;;  %v457_v11 = vmul.f32 %v813_v46, %v813_v46 }
 0x107   :  { %413 = vst.msk [vmem:[%s929_s3 + $0xc] sm:$0xf] %vm409_vm0, %v547_v15  ;;  %v467_v23 = vadd.f32 %v466_v14, %v452_v17  ;;  %v590_v24 = vadd.f32 %v589_v20, %v588_v18  ;;  %v591_v25 = vpop.f32.mrb[10].mxu0  ;;  %v614_v26 = vadd.f32 %v613_v22, %v612_v19  ;;  %v615_v27 = vpop.f32.mrb[10].mxu1  ;;  %v458_v14 = vmul.f32 %v819_v51, %v819_v51 }
 0x108   :  { %v592_v28 = vpop.f32.mrb[11].mxu0  ;;  %421 = vst.msk [vmem:[%s929_s3 + $0x2c] sm:$0xf] %vm409_vm0, %v555_v21  ;;  %v616_v29 = vpop.f32.mrb[11].mxu1  ;;  %v459_v17 = vmul.f32 %v841_v6, %v841_v6 }
 0x109   :  { %v299_v30 = vadd.f32 %v590_v24, %v809_v35  ;;  %v593_v31 = vadd.f32 %v592_v28, %v591_v25  ;;  %v331_v32 = vadd.f32 %v614_v26, %v809_v35  ;;  %v617_v33 = vadd.f32 %v616_v29, %v615_v27 }
 0x10b   :  { %v548_v34 = vpack.c.bf16 %v299_v30, %v299_v30  ;;  %v430_v36 = vadd.f32 %v429_v16, %v299_v30  ;;  %v453_v37 = vmul.f32 %v299_v30, %v299_v30  ;;  %v302_v38 = vadd.f32 %v593_v31, %v809_v35 }
 0x10c   :  { %v556_v39 = vpack.c.bf16 %v331_v32, %v331_v32  ;;  %v334_v40 = vadd.f32 %v617_v33, %v809_v35 }
 0x10d   :  { %414 = vst.msk [vmem:[%s929_s3 + $0x10] sm:$0xf] %vm409_vm0, %v548_v34  ;;  %v468_v41 = vadd.f32 %v467_v23, %v453_v37  ;;  %v549_v42 = vpack.c.bf16 %v302_v38, %v302_v38  ;;  %v431_v43 = vadd.f32 %v430_v36, %v302_v38  ;;  %v454_v44 = vmul.f32 %v302_v38, %v302_v38  ;;  %v594_v45 = vpop.f32.mrb[12].mxu0  ;;  %v618_v47 = vpop.f32.mrb[12].mxu1 }
 0x10e   :  { %v595_v48 = vpop.f32.mrb[13].mxu0  ;;  %422 = vst.msk [vmem:[%s929_s3 + $0x30] sm:$0xf] %vm409_vm0, %v556_v39  ;;  %v557_v49 = vpack.c.bf16 %v334_v40, %v334_v40  ;;  %v619_v50 = vpop.f32.mrb[13].mxu1  ;;  %v461_v23 = vmul.f32 %v331_v32, %v331_v32  ;;  %v462_v27 = vmul.f32 %v334_v40, %v334_v40 }
 0x10f   :  { %415 = vst.msk [vmem:[%s929_s3 + $0x14] sm:$0xf] %vm409_vm0, %v549_v42  ;;  %v469_v52 = vadd.f32 %v468_v41, %v454_v44  ;;  %v596_v53 = vadd.f32 %v595_v48, %v594_v45  ;;  %v597_v54 = vpop.f32.mrb[14].mxu0  ;;  %v620_v55 = vadd.f32 %v619_v50, %v618_v47  ;;  %v621_v56 = vpop.f32.mrb[14].mxu1 }
 0x110   :  { %v598_v57 = vpop.f32.mrb[15].mxu0  ;;  %423 = vst.msk [vmem:[%s929_s3 + $0x34] sm:$0xf] %vm409_vm0, %v557_v49  ;;  %v622_v58 = vpop.f32.mrb[15].mxu1 }
 0x111   :  { %v307_v59 = vadd.f32 %v596_v53, %v809_v35  ;;  %v599_v60 = vadd.f32 %v598_v57, %v597_v54  ;;  %v339_v61 = vadd.f32 %v620_v55, %v809_v35  ;;  %v623_v62 = vadd.f32 %v622_v58, %v621_v56 }
 0x113   :  { %v550_v63 = vpack.c.bf16 %v307_v59, %v307_v59  ;;  %v432_v0 = vadd.f32 %v431_v43, %v307_v59  ;;  %v455_v1 = vmul.f32 %v307_v59, %v307_v59  ;;  %v310_v2 = vadd.f32 %v599_v60, %v809_v35 }
 0x114   :  { %v558_v3 = vpack.c.bf16 %v339_v61, %v339_v61  ;;  %v342_v4 = vadd.f32 %v623_v62, %v809_v35 }
 0x115   :  { %416 = vst.msk [vmem:[%s929_s3 + $0x18] sm:$0xf] %vm409_vm0, %v550_v63  ;;  %v470_v5 = vadd.f32 %v469_v52, %v455_v1  ;;  %v551_v7 = vpack.c.bf16 %v310_v2, %v310_v2  ;;  %v433_v8 = vadd.f32 %v432_v0, %v310_v2  ;;  %v456_v9 = vmul.f32 %v310_v2, %v310_v2 }
 0x116   :  { %424 = vst.msk [vmem:[%s929_s3 + $0x38] sm:$0xf] %vm409_vm0, %v558_v3  ;;  %v559_v10 = vpack.c.bf16 %v342_v4, %v342_v4  ;;  %v464_v33 = vmul.f32 %v342_v4, %v342_v4 }
 0x117   :  { %417 = vst.msk [vmem:[%s929_s3 + $0x1c] sm:$0xf] %vm409_vm0, %v551_v7  ;;  %v434_v35 = vadd.f32 %v433_v8, %v813_v46  ;;  %v471_v12 = vadd.f32 %v470_v5, %v456_v9  ;;  %v460_v46 = vmul.f32 %v847_v13, %v847_v13 }
 0x118   :  { %425 = vst.msk [vmem:[%s929_s3 + $0x3c] sm:$0xf] %vm409_vm0, %v559_v10 }
 0x119   :  { %v435_v15 = vadd.f32 %v434_v35, %v819_v51  ;;  %v472_v16 = vadd.f32 %v471_v12, %v457_v11  ;;  %v463_v51 = vmul.f32 %v339_v61, %v339_v61 }
 0x11b   :  { %v473_v18 = vadd.f32 %v472_v16, %v458_v14  ;;  %v436_v19 = vadd.f32 %v435_v15, %v841_v6 }
 0x11d   :  { %v437_v20 = vadd.f32 %v436_v19, %v847_v13  ;;  %v474_v21 = vadd.f32 %v473_v18, %v459_v17 }
 0x11f   :  { %v438_v22 = vadd.f32 %v437_v20, %v331_v32  ;;  %v475_v24 = vadd.f32 %v474_v21, %v460_v46 }
 0x121   :  { %v476_v25 = vadd.f32 %v475_v24, %v461_v23  ;;  %v439_v26 = vadd.f32 %v438_v22, %v334_v40 }
 0x123   :  { %v477_v28 = vadd.f32 %v476_v25, %v462_v27  ;;  %v440_v29 = vadd.f32 %v439_v26, %v339_v61 }
 0x125   :  { %v478_v30 = vadd.f32 %v477_v28, %v463_v51  ;;  %v441_v31 = vadd.f32 %v440_v29, %v342_v4 }
 0x127   :  { %v442_v34 = vrot.slane %v441_v31, 4  ;;  %v479_v6 = vadd.f32 %v478_v30, %v464_v33 }
 0x129   :  { %v443_v36 = vadd.f32 %v442_v34, %v441_v31  ;;  %v480_v37 = vrot.slane %v479_v6, 4 }
 0x12b   :  { %v444_v38 = vrot.slane %v443_v36, 2  ;;  %v481_v39 = vadd.f32 %v480_v37, %v479_v6 }
 0x12d   :  { %v445_v13 = vadd.f32 %v444_v38, %v443_v36  ;;  %v482_v41 = vrot.slane %v481_v39, 2 }
 0x12f   :  { %v446_v42 = vrot.slane %v445_v13, 1  ;;  %v483_v32 = vadd.f32 %v482_v41, %v481_v39 }
 0x131   :  { %v447_v43 = vadd.f32 %v446_v42, %v445_v13  ;;  %v484_v44 = vrot.slane %v483_v32, 1 }
 0x133   :  { %448 = vst [vmem:[%s927_s4] sm:$0x1] %v447_v43  ;;  %v485_v40 = vadd.f32 %v484_v44, %v483_v32 }
 0x135   :  { %486 = vst [vmem:[%s927_s4 + $0x1] sm:$0x1] %v485_v40 }

</bundles_post_ra>
